<compile_context>
chip_gen: v7x
topology: tpu7x:2x2x1
jax: 0.10.0
libtpu: 0.0.40
codegen_flags: <defaults>
</compile_context>

<pallas_src>
import functools

import jax
import jax.numpy as jnp
from jax.experimental import pallas as pl
from jax.experimental.pallas import tpu as pltpu

EPS = 1e-5


def _round_up(x: int, m: int) -> int:
    return (x + m - 1) // m * m


def prenorm_kernel(x_ref, w_ref, b_ref, o_ref):
    # x_ref: (TM, D) tile of tokens
    # w_ref: (D, D)  folded weight  W' = gamma[:,None] * W   (in, out layout)
    # b_ref: (1, D)  folded bias    b' = beta @ W + b        (f32)
    # o_ref: (TM, D) output tile
    x = x_ref[...].astype(jnp.float32)
    d = x.shape[-1]
    inv_d = jnp.float32(1.0 / d)

    # --- LayerNorm statistics (f32, centered two-pass like PyTorch) ---------
    mean = jnp.sum(x, axis=-1, keepdims=True) * inv_d
    xc = x - mean
    var = jnp.sum(xc * xc, axis=-1, keepdims=True) * inv_d
    # Clamp: protects the discarded garbage rows of a partial tail tile (and
    # any fp round-off) from producing rsqrt of a negative number.
    inv = jax.lax.rsqrt(jnp.maximum(var, 0.0) + EPS)
    xn = xc * inv

    # --- fn: Linear(D -> D) on the MXU; matmul inputs in weight dtype -------
    out = jnp.dot(xn.astype(w_ref.dtype), w_ref[...],
                  preferred_element_type=jnp.float32)
    out = out + b_ref[...]

    o_ref[...] = out.astype(o_ref.dtype)


def _const_spec(shape):
    # Constant-index operand (same block every grid step): single-buffer it.
    try:
        return pl.BlockSpec(shape, lambda i: (0,) * len(shape),
                            pipeline_mode=pl.Buffered(1))
    except TypeError:  # older BlockSpec without pipeline_mode kwarg
        return pl.BlockSpec(shape, lambda i: (0,) * len(shape))


@functools.partial(jax.jit, static_argnames=("tm",))
def prenorm(x, gamma, beta, w, b, *, tm=512):
    """Fused LayerNorm(D) + Linear(D->D).  x: (B, N, D) -> (B, N, D).

    w must be laid out (in, out); PyTorch nn.Linear.weight is (out, in), so
    pass `weight.T` when porting checkpoints.  For best MXU throughput pass
    bf16 weights (the matmul runs in w.dtype with f32 accumulation).
    """
    B, N, D = x.shape
    M = B * N

    # Fold the LayerNorm affine into the Linear (one-time O(D^2), amortized
    # over all tokens).  Fold in f32, store W' back in the weight's dtype so a
    # bf16 weight path stays bf16 on the MXU; bias stays f32 (tiny).
    w_f32 = w.astype(jnp.float32)
    w_fold = (gamma.astype(jnp.float32)[:, None] * w_f32).astype(w.dtype)
    b_fold = (beta.astype(jnp.float32) @ w_f32
              + b.astype(jnp.float32)).reshape(1, D)

    # Row-tile alignment: sublane packing for x's dtype.
    row_align = 8 if x.dtype.itemsize >= 4 else 16

    # Generation-aware VMEM budget (v5e/v6e: 128 MiB, v7x: 64 MiB) with ~15%
    # headroom for Mosaic-internal scratch.
    try:
        vmem_cap = int(pltpu.get_tpu_info().vmem_capacity_bytes)
    except Exception:
        vmem_cap = 64 * 1024 * 1024  # conservative (v7x) fallback
    vmem_budget = int(0.85 * vmem_cap)

    io_bytes = x.dtype.itemsize
    w_bytes = w_fold.dtype.itemsize

    def footprint(tm_):
        return (2 * tm_ * D * io_bytes          # x tiles (double-buffered)
                + 2 * tm_ * D * io_bytes        # out tiles (double-buffered)
                + 1 * D * D * w_bytes           # W' (single-buffered, resident)
                + 2 * D * 4                     # bias
                + 5 * tm_ * D * 4)              # in-kernel f32 temporaries

    # Row tile: as large as requested, but small enough that (a) the single
    # "parallel" grid axis yields >= 2 tiles (feeds both TCs on v7x) and
    # (b) the VMEM footprint fits the budget.
    tm_eff = _round_up(max(min(tm, pl.cdiv(M, 2)), 1), row_align)
    while footprint(tm_eff) > vmem_budget and tm_eff > row_align:
        tm_eff = max(_round_up(tm_eff // 2, row_align), row_align)

    grid = (pl.cdiv(M, tm_eff),)  # partial tail tile handled by Pallas masking

    vmem_limit = int(min(max(2 * footprint(tm_eff), 32 * 1024 * 1024),
                         vmem_budget))

    x2 = x.reshape(M, D)  # metadata-only reshape; no pad, no extra HBM pass

    out = pl.pallas_call(
        prenorm_kernel,
        out_shape=jax.ShapeDtypeStruct((M, D), x.dtype),
        grid_spec=pltpu.PrefetchScalarGridSpec(
            num_scalar_prefetch=0,
            grid=grid,
            in_specs=[
                pl.BlockSpec((tm_eff, D), lambda i: (i, 0)),  # x (streamed)
                _const_spec((D, D)),                          # W' (resident)
                _const_spec((1, D)),                          # b' (resident)
            ],
            out_specs=pl.BlockSpec((tm_eff, D), lambda i: (i, 0)),
        ),
        compiler_params=pltpu.CompilerParams(
            dimension_semantics=("parallel",),
            vmem_limit_bytes=vmem_limit,
        ),
    )(x2, w_fold, b_fold)

    return out.reshape(B, N, D)


def _reference(x, gamma, beta, w, b):
    xf = x.astype(jnp.float32)
    mean = jnp.mean(xf, axis=-1, keepdims=True)
    var = jnp.mean((xf - mean) ** 2, axis=-1, keepdims=True)
    y = (xf - mean) / jnp.sqrt(var + EPS) * gamma + beta
    return jnp.einsum("bnd,de->bne", y, w.astype(jnp.float32)) + b


if __name__ == "__main__":
    key = jax.random.PRNGKey(0)
    B, N, D = 2, 8, 32   # small self-test shapes; real ViT perf wants D % 128 == 0

    kx, kw, kb, kg, kbe = jax.random.split(key, 5)
    x = jax.random.normal(kx, (B, N, D), dtype=jnp.float32)

    # Non-trivial LayerNorm affine so the gamma/beta fold is exercised.
    gamma = 1.0 + 0.1 * jax.random.normal(kg, (D,), jnp.float32)
    beta = 0.1 * jax.random.normal(kbe, (D,), jnp.float32)

    # fn = Linear(D, D) params; w laid out (in, out).
    w = jax.random.normal(kw, (D, D), dtype=jnp.float32) * 0.02
    b = jax.random.normal(kb, (D,), dtype=jnp.float32) * 0.02

    out = jax.block_until_ready(prenorm(x, gamma, beta, w, b))
    ref = _reference(x, gamma, beta, w, b)
    assert out.shape == (B, N, D)
    assert jnp.allclose(out, ref, atol=1e-4, rtol=1e-4), "mismatch vs reference"

    # Tail-path check: token count that is not a multiple of the row tile /
    # sublane alignment (exercises the pad-free partial-tile path).
    x_odd = jax.random.normal(jax.random.PRNGKey(3), (2, 9, D), jnp.float32)
    out_odd = jax.block_until_ready(prenorm(x_odd, gamma, beta, w, b))
    ref_odd = _reference(x_odd, gamma, beta, w, b)
    assert out_odd.shape == x_odd.shape
    assert jnp.allclose(out_odd, ref_odd, atol=1e-4, rtol=1e-4), "tail mismatch"

    print("KERNEL_OK")
</pallas_src>

<mosaic_0001>
module attributes {stable_mosaic.version = 11 : i64} {
  func.func @prenorm_kernel(%arg0: i32, %arg1: memref<8x32xf32, #tpu.memory_space<vmem>>, %arg2: memref<32x32xf32, #tpu.memory_space<vmem>>, %arg3: memref<1x32xf32, #tpu.memory_space<vmem>>, %arg4: memref<8x32xf32, #tpu.memory_space<vmem>>) attributes {dimension_semantics = [#tpu.dimension_semantics<parallel>], iteration_bounds = array<i64: 2>, scalar_prefetch = 0 : i64, scratch_operands = 0 : i64, tpu.core_type = #tpu.core_type<tc>, window_params = [{transform_indices = @transform_0, window_bounds = array<i64: 8, 32>}, {pipeline_mode = #tpu.pipeline_mode<synchronous>, transform_indices = @transform_1, window_bounds = array<i64: 32, 32>}, {pipeline_mode = #tpu.pipeline_mode<synchronous>, transform_indices = @transform_2, window_bounds = array<i64: 1, 32>}, {transform_indices = @transform_3, window_bounds = array<i64: 8, 32>}]} {
    %c0 = arith.constant 0 : index
    %c0_0 = arith.constant 0 : index
    %0 = vector.load %arg1[%c0, %c0_0] : memref<8x32xf32, #tpu.memory_space<vmem>>, vector<8x32xf32>
    %cst = arith.constant dense<0.000000e+00> : vector<8xf32>
    %1 = vector.multi_reduction <add>, %0, %cst [1] : vector<8x32xf32> to vector<8xf32>
    %2 = vector.shape_cast %1 : vector<8xf32> to vector<8x1xf32>
    %cst_1 = arith.constant 3.125000e-02 : f32
    %3 = vector.broadcast %cst_1 : f32 to vector<8x1xf32>
    %4 = arith.mulf %2, %3 : vector<8x1xf32>
    %5 = vector.broadcast %4 : vector<8x1xf32> to vector<8x32xf32>
    %6 = arith.subf %0, %5 : vector<8x32xf32>
    %7 = arith.mulf %6, %6 : vector<8x32xf32>
    %cst_2 = arith.constant dense<0.000000e+00> : vector<8xf32>
    %8 = vector.multi_reduction <add>, %7, %cst_2 [1] : vector<8x32xf32> to vector<8xf32>
    %9 = vector.shape_cast %8 : vector<8xf32> to vector<8x1xf32>
    %cst_3 = arith.constant 3.125000e-02 : f32
    %10 = vector.broadcast %cst_3 : f32 to vector<8x1xf32>
    %11 = arith.mulf %9, %10 : vector<8x1xf32>
    %cst_4 = arith.constant 0.000000e+00 : f32
    %12 = vector.broadcast %cst_4 : f32 to vector<8x1xf32>
    %13 = arith.maximumf %11, %12 : vector<8x1xf32>
    %cst_5 = arith.constant 9.99999974E-6 : f32
    %14 = vector.broadcast %cst_5 : f32 to vector<8x1xf32>
    %15 = arith.addf %13, %14 : vector<8x1xf32>
    %16 = math.rsqrt %15 : vector<8x1xf32>
    %17 = vector.broadcast %16 : vector<8x1xf32> to vector<8x32xf32>
    %18 = arith.mulf %6, %17 : vector<8x32xf32>
    %c0_6 = arith.constant 0 : index
    %c0_7 = arith.constant 0 : index
    %19 = vector.load %arg2[%c0_6, %c0_7] : memref<32x32xf32, #tpu.memory_space<vmem>>, vector<32x32xf32>
    %cst_8 = arith.constant dense<0.000000e+00> : vector<8x32xf32>
    %20 = tpu.matmul %18, %19, %cst_8 {dimension_numbers = #tpu.dot_dimension_numbers<[1], [0], [0], [1], [0, 0, 1, 1], [], []>} : vector<8x32xf32>, vector<32x32xf32>, vector<8x32xf32> -> vector<8x32xf32>
    %c0_9 = arith.constant 0 : index
    %c0_10 = arith.constant 0 : index
    %21 = vector.load %arg3[%c0_9, %c0_10] : memref<1x32xf32, #tpu.memory_space<vmem>>, vector<1x32xf32>
    %22 = vector.broadcast %21 : vector<1x32xf32> to vector<8x32xf32>
    %23 = arith.addf %20, %22 : vector<8x32xf32>
    %c0_11 = arith.constant 0 : index
    %c0_12 = arith.constant 0 : index
    %24 = vector.load %arg4[%c0_11, %c0_12] : memref<8x32xf32, #tpu.memory_space<vmem>>, vector<8x32xf32>
    tpu.vector_store %arg4[%c0_11, %c0_12], %23 {strides = array<i32>} : memref<8x32xf32, #tpu.memory_space<vmem>>, vector<8x32xf32>,
    return
  }
  func.func @transform_0(%arg0: i32) -> (i32, i32) {
    %c0_i32 = arith.constant 0 : i32
    %c0_i32_0 = arith.constant 0 : i32
    return %arg0, %c0_i32 : i32, i32
  }
  func.func @transform_1(%arg0: i32) -> (i32, i32) {
    %c0_i32 = arith.constant 0 : i32
    %c0_i32_0 = arith.constant 0 : i32
    %c0_i32_1 = arith.constant 0 : i32
    return %c0_i32, %c0_i32_0 : i32, i32
  }
  func.func @transform_2(%arg0: i32) -> (i32, i32) {
    %c0_i32 = arith.constant 0 : i32
    %c0_i32_0 = arith.constant 0 : i32
    %c0_i32_1 = arith.constant 0 : i32
    return %c0_i32, %c0_i32_0 : i32, i32
  }
  func.func @transform_3(%arg0: i32) -> (i32, i32) {
    %c0_i32 = arith.constant 0 : i32
    %c0_i32_0 = arith.constant 0 : i32
    return %arg0, %c0_i32 : i32, i32
  }
}

</mosaic_0001>

<bundles_post_ra>
// kernel: prenorm.1
= control target key start
LH: loop header
LB: loop body
LE: loop exit
PB: predicated region body
PF: predicated region fallthrough
CT: control target
= control target key end

     0   :  { %8 = vsyncpa [#allocation3], 0  ;;  %s625_s0 = inlined_call_operand.vmem [shape: f32[16,32], index: 0, kind: input, shape index: {}]   ;;  %s626_s1 = inlined_call_operand.vmem [shape: f32[32,32], index: 1, kind: input, shape index: {}]   ;;  %s627_s2 = inlined_call_operand.vmem [shape: f32[1,32], index: 2, kind: input, shape index: {}]   ;;  %s628_s3 = inlined_call_operand.hbm [shape: f32[16,32], index: 3, kind: output, shape index: {}]  }
   0x1   :  { %10 = vsyncpa [#allocation3 + $0x1], 0  ;;  %s506_s12 = smov 0   ;;  %s508_s13 = smov 0  }
   0x2   :  { %s510_s14 = smov 0   ;;  %s512_s15 = smov 0  }
   0x3 LB: > { %s527_s16 = sadd.s32 4294967295, %s480_s15   ;;  %s340_s17 = sadd.s32 4294967294, %s480_s15   ;;  %s480_s15 = sphi %s512_s15, %s634_s15   ;;  %s476_s14 = sphi %s510_s14, %s633_s14   ;;  %s472_s13 = sphi %s508_s13, %s632_s13   ;;  %s468_s12 = sphi %s506_s12, %s631_s12  }
   0x4   : > { %s531_s18 = sadd.s32 1, %s480_s15   ;;  %s91_s19 = sadd.s32 1, %s476_s14 }
   0x5   : > { %s88_s20 = ssub.s32 %s480_s15, %s531_s18  ;;  %p101_p0 = scmp.ne.s32.totalorder %s476_s14, %s472_s13 }
   0x6   : > { %p89_p1 = scmp.eq.s32.totalorder %s88_s20, 0  ;;  %p102_p2 = scmp.eq.s32.totalorder %s527_s16, 1 }
   0x7   : > { %p107_p3 = scmp.ne.s32.totalorder %s472_s13, %s468_s12  ;;  %p108_p4 = scmp.eq.s32.totalorder %s340_s17, 1 }
   0x8   : > { %s542_s21 = scalar_select %p89_p1, %s476_s14, %s91_s19  }
   0x9   : > { %p544_p5 = por %p102_p2, %p101_p0  ;;  %p548_p6 = por %p108_p4, %p107_p3 }
   0xa   : > { %p343_p7 = scmp.ge.s32.totalorder %s480_s15, 1  ;;  %p139_p8 = scmp.lt.s32.totalorder %s480_s15, 3 }
   0xc   : > { %p140_p9 = pnand %p343_p7, %p139_p8 }
   0xd   : > { %p162_p10 = scmp.lt.s32.totalorder (!%p140_p9), %s527_s16, 1  ;;  %vm167_vm0 = vcmask (!%p140_p9), 261120   ;;  %v182_v7 = vld [vmem:[%s626_s1] sm:$0xff] (!%p140_p9)  ;;  %v183_v8 = vld [vmem:[%s626_s1 + $0x8] sm:$0xff] (!%p140_p9)  ;;  %v184_v9 = vld [vmem:[%s626_s1 + $0x10] sm:$0xff] (!%p140_p9)  ;;  %v482_v10 = vmov (!%p140_p9), 0.0|0.0  }
   0xe   : > { %143 = sbr.rel (%p140_p9) target bundleno = 565 (0x235), region = 32  ;;  %368 = vmatprep.subr.bf16.mxu0 (!%p140_p9), %v482_v10  ;;  %v369_v11 = vpack.c.bf16 (!%p140_p9), %v183_v8, %v182_v7  ;;  %v185_v12 = vld [vmem:[%s626_s1 + $0x18] sm:$0xff] (!%p140_p9)  ;;  %vm483_vm1 = vmmov (!%p140_p9), 0   ;;  %v484_v13 = vmov (!%p140_p9), 0.0   ;;  %s159_s10 = sand.u32 (!%p140_p9), 1, %s472_s13  }
   0xf   : > { %365 = vmatprep.mubr.msk.f32.mxu0 (!%p140_p9), %vm483_vm1, %v484_v13  ;;  %v372_v14 = vpack.c.bf16 (!%p140_p9), %v185_v12, %v184_v9  ;;  %s344_s11 = sshll.u32 (!%p140_p9), %s159_s10, 3  ;;  %v346_v21 = vld [vmem:[%s627_s2] ss:$0 sm:$0xff] (!%p140_p9)  ;;  %s349_s20 = sshll.u32 (!%p140_p9), %s527_s16, 7 }
  0x10   : > { %370 = vmatpush3.bf16.msra.mxu0 (!%p140_p9), %v369_v11  ;;  %s268_s29 = scalar_lea.sflag (!%p140_p9), [#allocation3], %s159_s10 }
  0x11   : > { %371 = vmatprep.subr.bf16.mxu0 (!%p140_p9), %v482_v10 }
  0x14   : > { %373 = vmatpush3.bf16.msra.mxu0 (!%p140_p9), %v372_v14 }
  0x15   : > { %s163_s24 = scalar_select %p162_p10, %s527_s16, 1 }
  0x16   : > { %s485_s16 = smov [#allocation2]  }
  0x17   : > { %s345_s25 = sshll.u32 %s163_s24, 3  ;;  %s161_s24 = scalar_lea.vmem [#allocation2], %s344_s11 }
  0x18   : > { %s165_s28 = scalar_lea.vmem %s625_s0, %s345_s25  ;;  %s281_s25 = sshll.u32 %s161_s24, 4  ;;  %s584_s25 = int_to_ptr.vmem [resolvable:$true] %s281_s25 }
  0x19   : > { %v166_v0 = vld [vmem:[%s165_s28] sm:$0xff]  ;;  %s582_s28 = scalar_lea.hbm %s628_s3, %s349_s20  ;;  %s418_s30 = scalar_lea.vmem %s584_s25, 128 }
  0x1a   : > { %v168_v1 = vsel %vm167_vm0, %v166_v0, 0.0  ;;  %p419_p11 = scmp.ne.s32.totalorder %s584_s25, %s418_s30  ;;  %s422_s4 = sshll.u32 %s485_s16, 4  ;;  %s423_s4 = int_to_ptr.vmem [resolvable:$false] %s422_s4 }
  0x1b   : > { %169 = vadd.xlane.f32.xlu0 %v168_v1  ;;  %s424_s5 = scalar_lea.vmem %s423_s4, 256  ;;  %p425_p0 = scmp.lt.s32.totalorder %s584_s25, %s423_s4 }
  0x1c   : > { %p420_p12 = pnand %p419_p11, %p544_p5  ;;  %p426_p1 = scmp.lt.s32.totalorder %s424_s5, %s418_s30 }
  0x1e   : > { %p421_p13 = pneg %p420_p12  ;;  %p427_p2 = por %p426_p1, %p425_p0 }
  0x20   : > { %p428_p3 = pnand %p427_p2, %p421_p13 }
  0xa8   : > { %v170_v2 = vpop.xlane.xlu0 %169 }
  0xa9   : > { %v171_v3 = vmul.f32 0.03125, %v170_v2 }
  0xab   : > { %v172_v4 = vsub.f32 %v166_v0, %v171_v3 }
  0xad   : > { %v173_v5 = vmul.f32 %v172_v4, %v172_v4 }
  0xaf   : > { %v174_v6 = vsel %vm167_vm0, %v173_v5, 0.0 }
  0xb0   : > { %175 = vadd.xlane.f32.xlu0 %v174_v6 }
 0x13d   : > { %v176_v15 = vpop.xlane.xlu0 %175 }
 0x13e   : > { %v177_v16 = vmul.f32 0.03125, %v176_v15 }
 0x140   : > { %v178_v17 = vmax.f32 %v177_v16, 0.0 }
 0x142   : > { %v179_v18 = vadd.f32 1e-05, %v178_v17 }
 0x144   : > { %416 = vrsqrt.f32 %v179_v18 }
 0x14e   : > { %v417_v19 = vpop.eup %416 }
 0x14f   : > { %v181_v20 = vmul.f32 %v417_v19, %v172_v4 }
 0x151   : > { %366 = vmatmul.mubr.msk.f32.vlgmr.msra.gmra.mrb[0].mxu0 %vm167_vm0, %v181_v20 }
 0x224   : > { %v262_v22 = vpop.f32.mrb[0].mxu0 }
 0x225   : > { %v263_v23 = vadd.f32 %v346_v21, %v262_v22  ;;  %v367_v24 = vpop.f32.mrb[1].mxu0 }
 0x227   : > { %266 = vst.msk [vmem:[%s161_s24] sm:$0xff] %vm167_vm0, %v263_v23 }
 0x228   : > { %431 = shalt.err (!%p428_p3)
}
 0x229   : > { %s432_s6 = scalar_lea.hbm %s582_s28, 128  ;;  %s436_s9 = scalar_lea.hbm %s628_s3, 256 }
 0x22a   : > { %p433_p4 = scmp.ne.s32.totalorder %s582_s28, %s432_s6  ;;  %p437_p9 = scmp.lt.u32.totalorder %s582_s28, %s628_s3 }
 0x22b   : > { %p438_p10 = scmp.lt.u32.totalorder %s436_s9, %s432_s6  ;;  %p440_p12 = scmp.lt.u32.totalorder %s432_s6, %s582_s28 }
 0x22c   : > { %p434_p7 = pnand %p433_p4, %p544_p5 }
 0x22d   : > { %p439_p11 = por %p438_p10, %p437_p9 }
 0x22e   : > { %p435_p8 = pneg %p434_p7 }
 0x22f   : > { %p441_p13 = por %p440_p12, %p439_p11 }
 0x231   : > { %p442_p0 = pnand %p441_p13, %p435_p8 }
 0x233   : > { %445 = shalt.err (!%p442_p0)
}
 0x234   : > { %374 = dma.vmem_to_hbm [thread:$0]  (%p544_p5), %s584_s25, 128, %s582_s28, %s268_s29  }
 0x235 PF: > { %p380_p1 = scmp.ge.s32.totalorder %s480_s15, 2  ;;  %s293_s17 = sand.u32 1, %s468_s12  }
 0x236   : > { %s294_s19 = scalar_lea.sflag [#allocation3], %s293_s17 }
 0x237   : > { %p377_p2 = pnand %p380_p1, %p548_p6 }
 0x239   : > { %463 = dma.done.wait (!%p377_p2), %s294_s19, 128  }
 0x23a   : > { %465 = vsyncadd (!%p377_p2), %s294_s19, 4294967168  ;;  %p13_p3 = scmp.ge.s32.totalorder %s531_s18, 4   ;;  %s631_s12 = smov %s472_s13 }
 0x23b   : > { %s632_s13 = smov %s476_s14  ;;  %s633_s14 = smov %s542_s21 }
 0x23c   : > { %s634_s15 = smov %s531_s18  ;;  %15 = sbr.rel (!%p13_p3) target bundleno = 3 (0x3), region = 67 }
 0x243   :  { %299 = vsyncpa [#allocation3], 1 }
 0x244   :  { %301 = vsyncpa [#allocation3 + $0x1], 1 }

</bundles_post_ra>
